<compile_context>
chip_gen: v6e
topology: v6e:2x2x1
jax: 0.10.0
libtpu: 0.0.40
codegen_flags: <defaults>
</compile_context>

<pallas_src>
import jax
import jax.numpy as jnp
from jax.experimental import pallas as pl
from jax.experimental.pallas import tpu as pltpu


def _round_up(x, m):
    return (x + m - 1) // m * m


def _pick_tiles(B, C, L, itemsize):
    """Choose (batch_tile, channel_tile, length_tile)."""
    LANE = 128
    SUB = 8 if itemsize >= 4 else (16 if itemsize == 2 else 32)
    BUDGET = 4 * 1024 * 1024  # ~4 MiB per x block: safe for v7x's 64 MiB VMEM

    # Channel tile: full extent whenever it fits (a full-dim block is always
    # legal, even when C is not sublane-divisible); otherwise a sublane-multiple
    # chunk with a cdiv grid (edge block masked).
    if C <= SUB:
        tc = C
    else:
        cap = max(SUB, min(512, (BUDGET // (LANE * itemsize)) // SUB * SUB))
        tc = C if C <= cap else cap

    # Fold the whole batch into the block when it fits the budget with a
    # minimal (tc, 128) tile; otherwise batch stays a grid axis.
    tb = B if B * tc * LANE * itemsize <= BUDGET else 1

    # Length tile: one full-dim tile if it fits (always legal, no masking),
    # otherwise 128-multiple tiles sized to the budget (only the edge block
    # pays masked stores; everything else stays lane-dense).
    max_tl = max(LANE, (BUDGET // (tb * tc * itemsize)) // LANE * LANE)
    if _round_up(L, LANE) <= max_tl:
        tl = L
    else:
        tl = max_tl

    # Keep >=2 blocks along a "parallel" axis when the whole problem would fit
    # a single block, so v7x's two TensorCores both get work.
    if pl.cdiv(B, tb) * pl.cdiv(C, tc) * pl.cdiv(L, tl) == 1 and L > LANE:
        tl = _round_up(pl.cdiv(L, 2), LANE)

    return tb, tc, tl


def _noise_injection_kernel(w_ref, x_ref, n_ref, o_ref):
    # w_ref: SMEM (1,) f32 scalar weight
    # x_ref: VMEM (TB, TC, TL) input tile
    # n_ref: VMEM (TB, 1, TL)  per-batch noise row (broadcast over channels)
    # o_ref: VMEM (TB, TC, TL)
    w = w_ref[0]                                   # f32
    x = x_ref[...].astype(jnp.float32)
    n = n_ref[...].astype(jnp.float32)
    o_ref[...] = (x + w * n).astype(o_ref.dtype)   # f32 math, cast on store


@jax.jit
def noise_injection(x, weight, noise):
    """x: (B, C, L); weight: (1,) f32 scalar param; noise: (B, 1, L)."""
    B, C, L = x.shape
    weight = weight.astype(jnp.float32).reshape((1,))
    noise = noise.astype(x.dtype)
    itemsize = jnp.dtype(x.dtype).itemsize
    tb, tc, tl = _pick_tiles(B, C, L, itemsize)

    # Channel axis innermost: the noise block index is then invariant across
    # consecutive grid steps, so it is not re-fetched when C > tc.
    grid = (pl.cdiv(B, tb), pl.cdiv(L, tl), pl.cdiv(C, tc))

    out = pl.pallas_call(
        _noise_injection_kernel,
        out_shape=jax.ShapeDtypeStruct((B, C, L), x.dtype),
        grid=grid,
        in_specs=[
            pl.BlockSpec(memory_space=pltpu.SMEM),                   # scalar weight
            pl.BlockSpec((tb, tc, tl), lambda b, l, c: (b, c, l)),   # input tile
            pl.BlockSpec((tb, 1, tl), lambda b, l, c: (b, 0, l)),    # shared noise row
        ],
        out_specs=pl.BlockSpec((tb, tc, tl), lambda b, l, c: (b, c, l)),
        compiler_params=pltpu.CompilerParams(
            dimension_semantics=("parallel", "parallel", "parallel"),
            vmem_limit_bytes=32 * 1024 * 1024,
        ),
        cost_estimate=pl.CostEstimate(
            flops=int(2 * B * C * L),
            transcendentals=0,
            bytes_accessed=int((2 * B * C * L + B * L) * itemsize + 4),
        ),
    )(weight, x, noise)
    return out


def noise_injection_forward(x, weight, key):
    """Full module forward: samples noise ~ N(0,1) like PyTorch's .normal_()."""
    B, _, L = x.shape
    noise = jax.random.normal(key, (B, 1, L), dtype=x.dtype)
    return noise_injection(x, weight, noise)
    # TODO(synk): fusing noise generation into the kernel (pltpu.prng_seed +
    # pltpu.stateful_normal per (b, l) tile under @pl.when(c == 0)) would drop
    # the separate RNG op and the B*L noise HBM round-trip, but it changes the
    # RNG stream vs jax.random.normal, so it is left out here.


if __name__ == "__main__":
    key = jax.random.PRNGKey(0)
    k1x, k1n, k2x, k2n, k3x, k3n, k4x, k4n, kf = jax.random.split(key, 9)
    weight = jnp.full((1,), 0.5, dtype=jnp.float32)   # nonzero so noise path matters

    # --- test 1: module-sized shapes (B, C, L) = (2, 4, 16), f32 -------------
    B, C, L = 2, 4, 16
    x = jax.random.normal(k1x, (B, C, L), dtype=jnp.float32)
    noise = jax.random.normal(k1n, (B, 1, L), dtype=jnp.float32)
    out = jax.block_until_ready(noise_injection(x, weight, noise))
    ref = x + weight[0] * noise
    assert out.shape == (B, C, L)
    assert jnp.allclose(out, ref, atol=1e-6, rtol=1e-6)

    # --- test 2: ragged L (masked edge block, no pad/slice), f32 -------------
    B2, C2, L2 = 2, 8, 257
    x2 = jax.random.normal(k2x, (B2, C2, L2), dtype=jnp.float32)
    noise2 = jax.random.normal(k2n, (B2, 1, L2), dtype=jnp.float32)
    out2 = jax.block_until_ready(noise_injection(x2, weight, noise2))
    ref2 = x2 + weight[0] * noise2
    assert out2.shape == (B2, C2, L2)
    assert jnp.allclose(out2, ref2, atol=1e-6, rtol=1e-6)

    # --- test 3: bf16 I/O, f32 math inside the kernel -------------------------
    B3, C3, L3 = 2, 16, 128
    x3 = jax.random.normal(k3x, (B3, C3, L3), dtype=jnp.bfloat16)
    noise3 = jax.random.normal(k3n, (B3, 1, L3), dtype=jnp.bfloat16)
    out3 = jax.block_until_ready(noise_injection(x3, weight, noise3))
    ref3 = x3.astype(jnp.float32) + weight[0] * noise3.astype(jnp.float32)
    assert out3.shape == (B3, C3, L3)
    assert jnp.allclose(out3.astype(jnp.float32), ref3, atol=5e-2, rtol=5e-2)

    # --- test 4: non-sublane-divisible C and ragged L together ----------------
    B4, C4, L4 = 3, 12, 200
    x4 = jax.random.normal(k4x, (B4, C4, L4), dtype=jnp.float32)
    noise4 = jax.random.normal(k4n, (B4, 1, L4), dtype=jnp.float32)
    out4 = jax.block_until_ready(noise_injection(x4, weight, noise4))
    ref4 = x4 + weight[0] * noise4
    assert out4.shape == (B4, C4, L4)
    assert jnp.allclose(out4, ref4, atol=1e-6, rtol=1e-6)

    # --- full forward (in-module noise sampling, matches PyTorch semantics) ---
    out_fwd = jax.block_until_ready(noise_injection_forward(x, weight, kf))
    assert out_fwd.shape == (B, C, L)

    print("KERNEL_OK")
</pallas_src>

<mosaic_0001>
module attributes {stable_mosaic.version = 11 : i64} {
  func.func @_noise_injection_kernel(%arg0: i32, %arg1: i32, %arg2: i32, %arg3: memref<1xf32, #tpu.memory_space<smem>>, %arg4: memref<2x4x16xf32, #tpu.memory_space<vmem>>, %arg5: memref<2x1x16xf32, #tpu.memory_space<vmem>>, %arg6: memref<2x4x16xf32, #tpu.memory_space<vmem>>) attributes {dimension_semantics = [#tpu.dimension_semantics<parallel>, #tpu.dimension_semantics<parallel>, #tpu.dimension_semantics<parallel>], iteration_bounds = array<i64: 1, 1, 1>, scalar_prefetch = 0 : i64, scratch_operands = 0 : i64, tpu.core_type = #tpu.core_type<tc>, window_params = [{transform_indices = @transform_0, window_bounds = array<i64: 1>}, {transform_indices = @transform_1, window_bounds = array<i64: 2, 4, 16>}, {transform_indices = @transform_2, window_bounds = array<i64: 2, 1, 16>}, {transform_indices = @transform_3, window_bounds = array<i64: 2, 4, 16>}]} {
    %c0 = arith.constant 0 : index
    %0 = memref.load %arg3[%c0] : memref<1xf32, #tpu.memory_space<smem>>
    %c0_0 = arith.constant 0 : index
    %c0_1 = arith.constant 0 : index
    %c0_2 = arith.constant 0 : index
    %1 = vector.load %arg4[%c0_0, %c0_1, %c0_2] : memref<2x4x16xf32, #tpu.memory_space<vmem>>, vector<2x4x16xf32>
    %c0_3 = arith.constant 0 : index
    %c0_4 = arith.constant 0 : index
    %c0_5 = arith.constant 0 : index
    %2 = vector.load %arg5[%c0_3, %c0_4, %c0_5] : memref<2x1x16xf32, #tpu.memory_space<vmem>>, vector<2x1x16xf32>
    %3 = vector.broadcast %0 : f32 to vector<2x1x16xf32>
    %4 = arith.mulf %3, %2 : vector<2x1x16xf32>
    %5 = vector.broadcast %4 : vector<2x1x16xf32> to vector<2x4x16xf32>
    %6 = arith.addf %1, %5 : vector<2x4x16xf32>
    %c0_6 = arith.constant 0 : index
    %c0_7 = arith.constant 0 : index
    %c0_8 = arith.constant 0 : index
    %7 = vector.load %arg6[%c0_6, %c0_7, %c0_8] : memref<2x4x16xf32, #tpu.memory_space<vmem>>, vector<2x4x16xf32>
    tpu.vector_store %arg6[%c0_6, %c0_7, %c0_8], %6 {strides = array<i32>} : memref<2x4x16xf32, #tpu.memory_space<vmem>>, vector<2x4x16xf32>,
    return
  }
  func.func @transform_0(%arg0: i32, %arg1: i32, %arg2: i32) -> i32 {
    %c0_i32 = arith.constant 0 : i32
    %c0_i32_0 = arith.constant 0 : i32
    return %c0_i32 : i32
  }
  func.func @transform_1(%arg0: i32, %arg1: i32, %arg2: i32) -> (i32, i32, i32) {
    %c0_i32 = arith.constant 0 : i32
    return %arg0, %arg2, %arg1 : i32, i32, i32
  }
  func.func @transform_2(%arg0: i32, %arg1: i32, %arg2: i32) -> (i32, i32, i32) {
    %c0_i32 = arith.constant 0 : i32
    %c0_i32_0 = arith.constant 0 : i32
    return %arg0, %c0_i32, %arg1 : i32, i32, i32
  }
  func.func @transform_3(%arg0: i32, %arg1: i32, %arg2: i32) -> (i32, i32, i32) {
    %c0_i32 = arith.constant 0 : i32
    return %arg0, %arg2, %arg1 : i32, i32, i32
  }
}

</mosaic_0001>

<bundles_post_ra>
// kernel: noise_injection.1
= control target key start
LH: loop header
LB: loop body
LE: loop exit
PB: predicated region body
PF: predicated region fallthrough
CT: control target
= control target key end

     0   :  { %9 = vsyncpa [#allocation4], 0  ;;  %s165_s0 = inlined_call_operand.<no memory space> [shape: f32[1], index: 0, kind: input, shape index: {}]   ;;  %s166_s1 = inlined_call_operand.hbm [shape: f32[2,4,16], index: 1, kind: input, shape index: {}]   ;;  %s167_s2 = inlined_call_operand.vmem [shape: f32[2,1,16], index: 2, kind: input, shape index: {}]   ;;  %s168_s3 = inlined_call_operand.hbm [shape: f32[2,4,16], index: 3, kind: output, shape index: {}]  }
   0x1   :  { %10 = vsyncpa [#allocation5], 0  ;;  %s120_s12 = smov [#allocation3]  }
   0x2   :  { %s18_s13 = sshll.u32 %s120_s12, 4  ;;  %s19_s13 = int_to_ptr.vmem [resolvable:$true] %s18_s13 }
   0x3   :  { %s84_s14 = scalar_lea.vmem %s19_s13, 128  ;;  %p89_p1 = scmp.lt.s32.totalorder %s19_s13, %s19_s13 }
   0x4   :  { %p85_p0 = scmp.ne.s32.totalorder %s19_s13, %s84_s14  ;;  %p90_p2 = scmp.lt.s32.totalorder %s84_s14, %s84_s14 }
   0x6   :  { %p91_p3 = por %p90_p2, %p89_p1 }
   0x8   :  { %p92_p4 = pnand %p91_p3, %p85_p0 }
   0xa   :  { %95 = shalt.err (!%p92_p4)
}
   0xb   :  { %s121_s15 = smov 64   ;;  %s122_s16 = smov 4  }
   0xc   :  { %24 = dma.hbm_to_vmem [thread:$0]  %s166_s1, 128, %s19_s13, [#allocation4], %s121_s15, %s121_s15, %s122_s16  }
   0xd   :  { %116 = dma.done.wait [#allocation4], 128  }
   0xe   :  { %117 = vsyncadd [#allocation4], 4294967168  ;;  %v40_v0 = vlaneseq  ;;  %v35_v2 = vstv %s165_s0  ;;  %v33_v4 = vld [vmem:[%s167_s2] sm:$0x1]  ;;  %v34_v6 = vld [vmem:[%s167_s2 + $0x1] sm:$0x1] }
   0xf   :  { %v36_v5 = vmul.f32 %v35_v2, %v33_v4  ;;  %v31_v7 = vld [vmem:[#allocation3] sm:$0xf]  ;;  %v37_v8 = vmul.f32 %v35_v2, %v34_v6  ;;  %v32_v10 = vld [vmem:[#allocation3 + $0x4] sm:$0xf]  ;;  %s123_s1 = smov [#allocation6]   ;;  %vm52_vm0 = vcmask 125952  }
  0x10   :  { %v41_v1 = vshrl.u32 %v40_v0, 7  ;;  %s60_s25 = sshll.u32 %s123_s1, 4  ;;  %s61_s25 = int_to_ptr.vmem [resolvable:$true] %s60_s25 }
  0x11   :  { %s96_s0 = scalar_lea.vmem %s61_s25, 128  ;;  %p101_p6 = scmp.lt.s32.totalorder %s61_s25, %s61_s25 }
  0x12   :  { %v42_v3 = vsub.s32 0, %v41_v1  ;;  %p97_p5 = scmp.ne.s32.totalorder %s61_s25, %s96_s0  ;;  %p102_p7 = scmp.lt.s32.totalorder %s96_s0, %s96_s0 }
  0x14   :  { %v43_v9 = vrot.slane %v36_v5, %v42_v3  ;;  %v47_v11 = vrot.slane %v37_v8, %v42_v3  ;;  %p103_p8 = por %p102_p7, %p101_p6 }
  0x16   :  { %v50_v12 = vadd.f32 %v43_v9, %v31_v7  ;;  %v51_v13 = vadd.f32 %v47_v11, %v32_v10  ;;  %p104_p9 = pnand %p103_p8, %p97_p5 }
  0x18   :  { %53 = vst.msk [vmem:[#allocation6] sm:$0xf] %vm52_vm0, %v50_v12  ;;  %54 = vst.msk [vmem:[#allocation6 + $0x4] sm:$0xf] %vm52_vm0, %v51_v13 }
  0x19   :  { %107 = shalt.err (!%p104_p9)
}
  0x1a   :  { %66 = dma.vmem_to_hbm [thread:$0]  %s61_s25, 128, %s168_s3, [#allocation5], %s121_s15, %s121_s15, %s122_s16  }
  0x1b   :  { %118 = dma.done.wait [#allocation5], 128  }
  0x1c   :  { %119 = vsyncadd [#allocation5], 4294967168 }
  0x1d   :  { %70 = vsyncpa [#allocation4], 1 }
  0x1e   :  { %71 = vsyncpa [#allocation5], 1 }

</bundles_post_ra>
